<compile_context>
chip_gen: v5e
topology: v5e:2x2
jax: 0.10.0
libtpu: 0.0.40
codegen_flags: <defaults>
</compile_context>

<pallas_src>
import jax
import jax.numpy as jnp
from jax.experimental import pallas as pl
from jax.experimental.pallas import tpu as pltpu

EPS = 1e-5
LANE = 128


def _bn_train(h, gamma, beta):
    """Training-mode BatchNorm1d (biased variance, eps=1e-5), one pass over h.

    mean and E[h^2] are two independent batch-axis reductions (XLU), variance
    is E[h^2] - mean^2, and the normalize is folded into one scale/shift pass.
    """
    inv_n = 1.0 / h.shape[0]                       # static compile-time constant
    mean = jnp.sum(h, axis=0, keepdims=True) * inv_n
    ex2 = jnp.sum(h * h, axis=0, keepdims=True) * inv_n
    var = ex2 - mean * mean
    scale = jax.lax.rsqrt(var + EPS) * gamma       # (1, W) — EUP rsqrt, cheap
    shift = beta - mean * scale                    # (1, W)
    return h * scale + shift


def resnet_kernel(x_ref, w_in_ref, b_in_ref,
                  w1_ref, w2_ref, bn_ref,
                  w_out_ref, b_out_ref,
                  out_ref, act_ref, acc_ref):
    """grid = (num_blocks, hidden // TK).

    Per step we stream one (hidden, TK) column tile of w1 (bf16), the matching
    (TK, hidden) row tile of w2 (bf16) and (on block change) the packed BN
    params. The carried activation lives in act_ref; the second matmul's f32
    partial sums accumulate in acc_ref; BN2 + residual fire on the last K tile.
    """
    blk = pl.program_id(0)
    kt = pl.program_id(1)
    nblk = pl.num_programs(0)
    nk = pl.num_programs(1)
    tk = w1_ref.shape[1]

    # input_layer(x) once, at the very first grid step.
    @pl.when((blk == 0) & (kt == 0))
    def _():
        act_ref[...] = jnp.dot(x_ref[...].astype(jnp.bfloat16), w_in_ref[...],
                               preferred_element_type=jnp.float32) + b_in_ref[...]

    # zero the second-matmul accumulator at the start of each block.
    @pl.when(kt == 0)
    def _():
        acc_ref[...] = jnp.zeros_like(acc_ref)

    x = act_ref[...]                               # block input / residual identity
    x_bf = x.astype(jnp.bfloat16)

    # Linear1 column tile -> BN1 -> ReLU (per-feature => column-local), then the
    # matching slice of Linear2 accumulated into acc. (b1/b2 omitted: exactly
    # cancelled by the BN mean subtraction that follows each Linear.)
    col = pl.multiple_of(kt * tk, 128)
    g1 = bn_ref[pl.ds(0, 1), pl.ds(col, tk)]
    be1 = bn_ref[pl.ds(1, 1), pl.ds(col, tk)]
    h = jnp.dot(x_bf, w1_ref[...], preferred_element_type=jnp.float32)  # (B, TK)
    h = jnp.maximum(_bn_train(h, g1, be1), 0.0)
    acc_ref[...] += jnp.dot(h.astype(jnp.bfloat16), w2_ref[...],
                            preferred_element_type=jnp.float32)         # (B, H)

    last_k = kt == nk - 1

    # BN2 -> relu(x + identity) on the final K tile of the block.
    @pl.when(last_k)
    def _():
        g2 = bn_ref[pl.ds(2, 1), :]
        be2 = bn_ref[pl.ds(3, 1), :]
        h2 = _bn_train(acc_ref[...], g2, be2)
        act_ref[...] = jnp.maximum(h2 + x, 0.0)

    # output head on the very last grid step (lane-dense padded N).
    @pl.when(last_k & (blk == nblk - 1))
    def _():
        xf = act_ref[...]
        out_ref[...] = (jnp.dot(xf.astype(jnp.bfloat16), w_out_ref[...],
                                preferred_element_type=jnp.float32)
                        + b_out_ref[...]).astype(out_ref.dtype)


def _pick_tk(hidden):
    for cand in (512, 256, 128):
        if hidden % cand == 0:
            return cand
    raise ValueError("hidden_size must be a multiple of 128")


def _vmem_limit_bytes(batch, in_size, hidden, tk, n_pad):
    f32, bf16 = 4, 2
    resident = (batch * in_size * f32            # x
                + in_size * hidden * bf16        # w_in
                + hidden * f32                   # b_in
                + hidden * n_pad * bf16          # w_out (padded)
                + n_pad * f32                    # b_out (padded)
                + batch * n_pad * f32            # out
                + 2 * batch * hidden * f32)      # act + acc scratch
    streamed = 2 * (hidden * tk + tk * hidden) * bf16   # w1/w2 tiles, double-buffered
    streamed += 2 * 4 * hidden * f32                    # packed BN params
    need = resident + streamed
    # 2x headroom for compiler temporaries; clamp to stay sane on v7x (64 MiB
    # physical) while allowing larger slabs on v5e/v6e (128 MiB physical).
    return int(min(max(2 * need, 32 * 1024 * 1024), 96 * 1024 * 1024))


def resnet_forward(x, kparams, *, tk=None):
    """x: (batch, input_size) f32; kparams from prepare_kernel_params()."""
    nblk, hidden, _ = kparams["w1"].shape
    assert nblk >= 1, "need at least one residual block (num_layers >= 2)"
    assert hidden % 128 == 0, "hidden_size must be a multiple of 128"
    batch, in_size = x.shape
    n_pad = kparams["w_out"].shape[1]
    n_cls = kparams["n_cls"]

    if tk is None:
        tk = _pick_tk(hidden)
    assert hidden % tk == 0 and tk % 128 == 0
    nk = hidden // tk

    def full(shape):          # resident across the grid (constant block index)
        return pl.BlockSpec(shape, lambda i, k, _s=shape: (0,) * len(_s))

    out_padded = pl.pallas_call(
        resnet_kernel,
        out_shape=jax.ShapeDtypeStruct((batch, n_pad), jnp.float32),
        grid_spec=pltpu.PrefetchScalarGridSpec(
            num_scalar_prefetch=0,
            grid=(nblk, nk),
            in_specs=[
                full((batch, in_size)),                                # x
                full((in_size, hidden)),                               # w_in (bf16)
                full((1, hidden)),                                     # b_in
                pl.BlockSpec((None, hidden, tk), lambda i, k: (i, 0, k)),  # w1 cols
                pl.BlockSpec((None, tk, hidden), lambda i, k: (i, k, 0)),  # w2 rows
                pl.BlockSpec((None, 4, hidden), lambda i, k: (i, 0, 0)),   # bn pack
                full((hidden, n_pad)),                                 # w_out (bf16)
                full((1, n_pad)),                                      # b_out
            ],
            out_specs=full((batch, n_pad)),
            scratch_shapes=[
                pltpu.VMEM((batch, hidden), jnp.float32),  # carried activation
                pltpu.VMEM((batch, hidden), jnp.float32),  # 2nd-matmul accumulator
            ],
        ),
        compiler_params=pltpu.CompilerParams(
            # block axis carries state, K axis is a reduction: both sequential.
            dimension_semantics=("arbitrary", "arbitrary"),
            vmem_limit_bytes=_vmem_limit_bytes(batch, in_size, hidden, tk, n_pad),
        ),
    )(x, kparams["w_in"], kparams["b_in"],
      kparams["w1"], kparams["w2"], kparams["bn"],
      kparams["w_out"], kparams["b_out"])
    return out_padded[:, :n_cls]


def prepare_kernel_params(params):
    """One-time (per parameter set) prep: bf16 weights, padded lane-dense output
    head, packed BN params. Hoisted out of the forward."""
    hidden = params["w1"].shape[1]
    n_cls = params["w_out"].shape[1]
    n_pad = max(LANE, ((n_cls + LANE - 1) // LANE) * LANE)
    w_out = (jnp.zeros((hidden, n_pad), jnp.float32)
             .at[:, :n_cls].set(params["w_out"]).astype(jnp.bfloat16))
    b_out = jnp.zeros((1, n_pad), jnp.float32).at[:, :n_cls].set(params["b_out"])
    bn = jnp.concatenate(
        [params["g1"], params["be1"], params["g2"], params["be2"]], axis=1)
    return {
        "w_in": params["w_in"].astype(jnp.bfloat16),
        "b_in": params["b_in"],
        "w1": params["w1"].astype(jnp.bfloat16),
        "w2": params["w2"].astype(jnp.bfloat16),
        "bn": bn,                                   # (nblk, 4, hidden) f32
        "w_out": w_out,                             # (hidden, n_pad) bf16
        "b_out": b_out,                             # (1, n_pad) f32
        "n_cls": n_cls,
    }


def init_params(key, input_size, hidden_size, num_layers, num_classes=10):
    """Deterministic synthetic init mirroring PyTorch defaults:
    Linear weights/biases ~ U(-1/sqrt(fan_in), +), BN gamma=1, beta=0.
    Linear weights are stored pre-transposed as (in, out), in f32."""
    nblk = num_layers // 2

    def linear(k, fan_in, fan_out):
        kw, kb = jax.random.split(k)
        bound = 1.0 / (fan_in ** 0.5)
        w = jax.random.uniform(kw, (fan_in, fan_out), jnp.float32, -bound, bound)
        b = jax.random.uniform(kb, (1, fan_out), jnp.float32, -bound, bound)
        return w, b

    keys = jax.random.split(key, 2 + 2 * nblk)
    w_in, b_in = linear(keys[0], input_size, hidden_size)
    w_out, b_out = linear(keys[1], hidden_size, num_classes)

    w1s, b1s, w2s, b2s = [], [], [], []
    for i in range(nblk):
        w1, b1 = linear(keys[2 + 2 * i], hidden_size, hidden_size)
        w2, b2 = linear(keys[3 + 2 * i], hidden_size, hidden_size)
        w1s.append(w1); b1s.append(b1); w2s.append(w2); b2s.append(b2)

    return {
        "w_in": w_in, "b_in": b_in,
        "w1": jnp.stack(w1s), "b1": jnp.stack(b1s),
        "g1": jnp.ones((nblk, 1, hidden_size), jnp.float32),
        "be1": jnp.zeros((nblk, 1, hidden_size), jnp.float32),
        "w2": jnp.stack(w2s), "b2": jnp.stack(b2s),
        "g2": jnp.ones((nblk, 1, hidden_size), jnp.float32),
        "be2": jnp.zeros((nblk, 1, hidden_size), jnp.float32),
        "w_out": w_out, "b_out": b_out,
    }


def reference_forward(x, params):
    """Pure-JAX reference mirroring the PyTorch module (training-mode BN,
    pre-BN biases included, two-pass variance). Matmuls use the same
    bf16-input / f32-accumulation precision as the kernel's MXU path.
    NOTE: this validates MXU parity, not divergence from a true f32 torch run."""
    def dot(a, w):
        return jnp.dot(a.astype(jnp.bfloat16), w.astype(jnp.bfloat16),
                       preferred_element_type=jnp.float32)

    def bn(h, gamma, beta):
        mean = jnp.mean(h, axis=0, keepdims=True)
        var = jnp.mean((h - mean) ** 2, axis=0, keepdims=True)
        return (h - mean) * jax.lax.rsqrt(var + EPS) * gamma + beta

    x = dot(x, params["w_in"]) + params["b_in"]
    for i in range(params["w1"].shape[0]):
        identity = x
        h = dot(x, params["w1"][i]) + params["b1"][i]
        h = bn(h, params["g1"][i], params["be1"][i])
        h = jnp.maximum(h, 0.0)
        h = dot(h, params["w2"][i]) + params["b2"][i]
        h = bn(h, params["g2"][i], params["be2"][i])
        x = jnp.maximum(h + identity, 0.0)
    return dot(x, params["w_out"]) + params["b_out"]


if __name__ == "__main__":
    # Small shapes consistent with the module's forward:
    # batch=8, input_size=128, hidden_size=256, num_layers=4 -> 2 residual
    # blocks, 10 classes. tk=128 forces 2 K tiles to exercise the tiled
    # (BN1-per-column-tile + accumulated second matmul) path.
    # NOTE: BN uses full-batch stats, so the batch cannot be zero-padded; at
    # batch=8 the kernel is weight-DMA bound — larger real batches amortize it.
    batch, input_size, hidden_size, num_layers = 8, 128, 256, 4

    key = jax.random.PRNGKey(0)
    kx, kp = jax.random.split(key)
    x = jax.random.normal(kx, (batch, input_size), jnp.float32)
    params = init_params(kp, input_size, hidden_size, num_layers)
    kparams = prepare_kernel_params(params)

    out = resnet_forward(x, kparams, tk=128)
    out = jax.block_until_ready(out)

    ref = reference_forward(x, params)
    assert out.shape == (batch, 10)
    # Tolerance absorbs the (mathematically exact) dropped pre-BN biases, the
    # one-pass BN variance form, and bf16 MXU input rounding.
    assert jnp.allclose(out, ref, atol=5e-3, rtol=5e-3), (
        "mismatch vs JAX reference: max abs diff "
        f"{float(jnp.max(jnp.abs(out - ref)))}")

    print("KERNEL_OK")
</pallas_src>

<mosaic_0001>
module attributes {stable_mosaic.version = 11 : i64} {
  func.func @resnet_kernel(%arg0: i32, %arg1: i32, %arg2: memref<8x128xf32, #tpu.memory_space<vmem>>, %arg3: memref<128x256xbf16, #tpu.memory_space<vmem>>, %arg4: memref<1x256xf32, #tpu.memory_space<vmem>>, %arg5: memref<1x256x128xbf16, #tpu.memory_space<vmem>>, %arg6: memref<1x128x256xbf16, #tpu.memory_space<vmem>>, %arg7: memref<1x4x256xf32, #tpu.memory_space<vmem>>, %arg8: memref<256x128xbf16, #tpu.memory_space<vmem>>, %arg9: memref<1x128xf32, #tpu.memory_space<vmem>>, %arg10: memref<8x128xf32, #tpu.memory_space<vmem>>, %arg11: memref<8x256xf32, #tpu.memory_space<vmem>>, %arg12: memref<8x256xf32, #tpu.memory_space<vmem>>) attributes {dimension_semantics = [#tpu.dimension_semantics<arbitrary>, #tpu.dimension_semantics<arbitrary>], iteration_bounds = array<i64: 2, 2>, scalar_prefetch = 0 : i64, scratch_operands = 2 : i64, tpu.core_type = #tpu.core_type<tc>, window_params = [{pipeline_mode = #tpu.pipeline_mode<synchronous>, transform_indices = @transform_0, window_bounds = array<i64: 8, 128>}, {pipeline_mode = #tpu.pipeline_mode<synchronous>, transform_indices = @transform_1, window_bounds = array<i64: 128, 256>}, {pipeline_mode = #tpu.pipeline_mode<synchronous>, transform_indices = @transform_2, window_bounds = array<i64: 1, 256>}, {transform_indices = @transform_3, window_bounds = array<i64: 1, 256, 128>}, {transform_indices = @transform_4, window_bounds = array<i64: 1, 128, 256>}, {transform_indices = @transform_5, window_bounds = array<i64: 1, 4, 256>}, {pipeline_mode = #tpu.pipeline_mode<synchronous>, transform_indices = @transform_6, window_bounds = array<i64: 256, 128>}, {pipeline_mode = #tpu.pipeline_mode<synchronous>, transform_indices = @transform_7, window_bounds = array<i64: 1, 128>}, {pipeline_mode = #tpu.pipeline_mode<synchronous>, transform_indices = @transform_8, window_bounds = array<i64: 8, 128>}]} {
    %c0_i32 = arith.constant 0 : i32
    %0 = arith.cmpi eq, %arg0, %c0_i32 : i32
    %c0_i32_0 = arith.constant 0 : i32
    %1 = arith.cmpi eq, %arg1, %c0_i32_0 : i32
    %2 = arith.andi %0, %1 : i1
    %3 = arith.extui %2 : i1 to i32
    %c0_i32_1 = arith.constant 0 : i32
    %4 = arith.cmpi ne, %3, %c0_i32_1 : i32
    scf.if %4 {
      %c0_28 = arith.constant 0 : index
      %c0_29 = arith.constant 0 : index
      %58 = vector.load %arg2[%c0_28, %c0_29] : memref<8x128xf32, #tpu.memory_space<vmem>>, vector<8x128xf32>
      %59 = arith.truncf %58 : vector<8x128xf32> to vector<8x128xbf16>
      %c0_30 = arith.constant 0 : index
      %c0_31 = arith.constant 0 : index
      %60 = vector.load %arg3[%c0_30, %c0_31] : memref<128x256xbf16, #tpu.memory_space<vmem>>, vector<128x256xbf16>
      %cst_32 = arith.constant dense<0.000000e+00> : vector<8x256xf32>
      %61 = tpu.matmul %59, %60, %cst_32 {dimension_numbers = #tpu.dot_dimension_numbers<[1], [0], [0], [1], [0, 0, 1, 1], [], []>} : vector<8x128xbf16>, vector<128x256xbf16>, vector<8x256xf32> -> vector<8x256xf32>
      %c0_33 = arith.constant 0 : index
      %c0_34 = arith.constant 0 : index
      %62 = vector.load %arg4[%c0_33, %c0_34] : memref<1x256xf32, #tpu.memory_space<vmem>>, vector<1x256xf32>
      %63 = vector.broadcast %62 : vector<1x256xf32> to vector<8x256xf32>
      %64 = arith.addf %61, %63 : vector<8x256xf32>
      %c0_35 = arith.constant 0 : index
      %c0_36 = arith.constant 0 : index
      %65 = vector.load %arg11[%c0_35, %c0_36] : memref<8x256xf32, #tpu.memory_space<vmem>>, vector<8x256xf32>
      tpu.vector_store %arg11[%c0_35, %c0_36], %64 {strides = array<i32>} : memref<8x256xf32, #tpu.memory_space<vmem>>, vector<8x256xf32>,
    } else {
    }
    %c0_i32_2 = arith.constant 0 : i32
    %5 = arith.cmpi eq, %arg1, %c0_i32_2 : i32
    %6 = arith.extui %5 : i1 to i32
    %c0_i32_3 = arith.constant 0 : i32
    %7 = arith.cmpi ne, %6, %c0_i32_3 : i32
    scf.if %7 {
      %cst_28 = arith.constant 0.000000e+00 : f32
      %58 = vector.broadcast %cst_28 : f32 to vector<8x256xf32>
      %c0_29 = arith.constant 0 : index
      %c0_30 = arith.constant 0 : index
      %59 = vector.load %arg12[%c0_29, %c0_30] : memref<8x256xf32, #tpu.memory_space<vmem>>, vector<8x256xf32>
      tpu.vector_store %arg12[%c0_29, %c0_30], %58 {strides = array<i32>} : memref<8x256xf32, #tpu.memory_space<vmem>>, vector<8x256xf32>,
    } else {
    }
    %c0 = arith.constant 0 : index
    %c0_4 = arith.constant 0 : index
    %8 = vector.load %arg11[%c0, %c0_4] : memref<8x256xf32, #tpu.memory_space<vmem>>, vector<8x256xf32>
    %9 = arith.truncf %8 : vector<8x256xf32> to vector<8x256xbf16>
    %c128_i32 = arith.constant 128 : i32
    %10 = arith.muli %arg1, %c128_i32 : i32
    %11 = tpu.assume_multiple %10, 128 : i32
    %c0_5 = arith.constant 0 : index
    %c0_6 = arith.constant 0 : index
    %12 = arith.index_cast %11 : i32 to index
    %13 = vector.load %arg7[%c0_5, %c0_6, %12] : memref<1x4x256xf32, #tpu.memory_space<vmem>>, vector<1x1x128xf32>
    %14 = vector.shape_cast %13 : vector<1x1x128xf32> to vector<1x128xf32>
    %c0_7 = arith.constant 0 : index
    %c1 = arith.constant 1 : index
    %15 = arith.index_cast %11 : i32 to index
    %16 = vector.load %arg7[%c0_7, %c1, %15] : memref<1x4x256xf32, #tpu.memory_space<vmem>>, vector<1x1x128xf32>
    %17 = vector.shape_cast %16 : vector<1x1x128xf32> to vector<1x128xf32>
    %c0_8 = arith.constant 0 : index
    %c0_9 = arith.constant 0 : index
    %c0_10 = arith.constant 0 : index
    %18 = vector.load %arg5[%c0_8, %c0_9, %c0_10] : memref<1x256x128xbf16, #tpu.memory_space<vmem>>, vector<1x256x128xbf16>
    %19 = vector.shape_cast %18 : vector<1x256x128xbf16> to vector<256x128xbf16>
    %cst = arith.constant dense<0.000000e+00> : vector<8x128xf32>
    %20 = tpu.matmul %9, %19, %cst {dimension_numbers = #tpu.dot_dimension_numbers<[1], [0], [0], [1], [0, 0, 1, 1], [], []>} : vector<8x256xbf16>, vector<256x128xbf16>, vector<8x128xf32> -> vector<8x128xf32>
    %cst_11 = arith.constant dense<0.000000e+00> : vector<128xf32>
    %21 = vector.multi_reduction <add>, %20, %cst_11 [0] : vector<8x128xf32> to vector<128xf32>
    %22 = vector.shape_cast %21 : vector<128xf32> to vector<1x128xf32>
    %cst_12 = arith.constant 1.250000e-01 : f32
    %23 = vector.broadcast %cst_12 : f32 to vector<1x128xf32>
    %24 = arith.mulf %22, %23 : vector<1x128xf32>
    %25 = arith.mulf %20, %20 : vector<8x128xf32>
    %cst_13 = arith.constant dense<0.000000e+00> : vector<128xf32>
    %26 = vector.multi_reduction <add>, %25, %cst_13 [0] : vector<8x128xf32> to vector<128xf32>
    %27 = vector.shape_cast %26 : vector<128xf32> to vector<1x128xf32>
    %cst_14 = arith.constant 1.250000e-01 : f32
    %28 = vector.broadcast %cst_14 : f32 to vector<1x128xf32>
    %29 = arith.mulf %27, %28 : vector<1x128xf32>
    %30 = arith.mulf %24, %24 : vector<1x128xf32>
    %31 = arith.subf %29, %30 : vector<1x128xf32>
    %cst_15 = arith.constant 9.99999974E-6 : f32
    %32 = vector.broadcast %cst_15 : f32 to vector<1x128xf32>
    %33 = arith.addf %31, %32 : vector<1x128xf32>
    %34 = math.rsqrt %33 : vector<1x128xf32>
    %35 = arith.mulf %34, %14 : vector<1x128xf32>
    %36 = arith.mulf %24, %35 : vector<1x128xf32>
    %37 = arith.subf %17, %36 : vector<1x128xf32>
    %38 = vector.broadcast %35 : vector<1x128xf32> to vector<8x128xf32>
    %39 = arith.mulf %20, %38 : vector<8x128xf32>
    %40 = vector.broadcast %37 : vector<1x128xf32> to vector<8x128xf32>
    %41 = arith.addf %39, %40 : vector<8x128xf32>
    %cst_16 = arith.constant 0.000000e+00 : f32
    %42 = vector.broadcast %cst_16 : f32 to vector<8x128xf32>
    %43 = arith.maximumf %41, %42 : vector<8x128xf32>
    %c0_17 = arith.constant 0 : index
    %c0_18 = arith.constant 0 : index
    %44 = vector.load %arg12[%c0_17, %c0_18] : memref<8x256xf32, #tpu.memory_space<vmem>>, vector<8x256xf32>
    %45 = arith.truncf %43 : vector<8x128xf32> to vector<8x128xbf16>
    %c0_19 = arith.constant 0 : index
    %c0_20 = arith.constant 0 : index
    %c0_21 = arith.constant 0 : index
    %46 = vector.load %arg6[%c0_19, %c0_20, %c0_21] : memref<1x128x256xbf16, #tpu.memory_space<vmem>>, vector<1x128x256xbf16>
    %47 = vector.shape_cast %46 : vector<1x128x256xbf16> to vector<128x256xbf16>
    %cst_22 = arith.constant dense<0.000000e+00> : vector<8x256xf32>
    %48 = tpu.matmul %45, %47, %cst_22 {dimension_numbers = #tpu.dot_dimension_numbers<[1], [0], [0], [1], [0, 0, 1, 1], [], []>} : vector<8x128xbf16>, vector<128x256xbf16>, vector<8x256xf32> -> vector<8x256xf32>
    %49 = arith.addf %44, %48 : vector<8x256xf32>
    %c0_23 = arith.constant 0 : index
    %c0_24 = arith.constant 0 : index
    %50 = vector.load %arg12[%c0_23, %c0_24] : memref<8x256xf32, #tpu.memory_space<vmem>>, vector<8x256xf32>
    tpu.vector_store %arg12[%c0_23, %c0_24], %49 {strides = array<i32>} : memref<8x256xf32, #tpu.memory_space<vmem>>, vector<8x256xf32>,
    %c1_i32 = arith.constant 1 : i32
    %51 = arith.cmpi eq, %arg1, %c1_i32 : i32
    %52 = arith.extui %51 : i1 to i32
    %c0_i32_25 = arith.constant 0 : i32
    %53 = arith.cmpi ne, %52, %c0_i32_25 : i32
    scf.if %53 {
      %c0_28 = arith.constant 0 : index
      %c2 = arith.constant 2 : index
      %c0_29 = arith.constant 0 : index
      %58 = vector.load %arg7[%c0_28, %c2, %c0_29] : memref<1x4x256xf32, #tpu.memory_space<vmem>>, vector<1x1x256xf32>
      %59 = vector.shape_cast %58 : vector<1x1x256xf32> to vector<1x256xf32>
      %c0_30 = arith.constant 0 : index
      %c3 = arith.constant 3 : index
      %c0_31 = arith.constant 0 : index
      %60 = vector.load %arg7[%c0_30, %c3, %c0_31] : memref<1x4x256xf32, #tpu.memory_space<vmem>>, vector<1x1x256xf32>
      %61 = vector.shape_cast %60 : vector<1x1x256xf32> to vector<1x256xf32>
      %c0_32 = arith.constant 0 : index
      %c0_33 = arith.constant 0 : index
      %62 = vector.load %arg12[%c0_32, %c0_33] : memref<8x256xf32, #tpu.memory_space<vmem>>, vector<8x256xf32>
      %cst_34 = arith.constant dense<0.000000e+00> : vector<256xf32>
      %63 = vector.multi_reduction <add>, %62, %cst_34 [0] : vector<8x256xf32> to vector<256xf32>
      %64 = vector.shape_cast %63 : vector<256xf32> to vector<1x256xf32>
      %cst_35 = arith.constant 1.250000e-01 : f32
      %65 = vector.broadcast %cst_35 : f32 to vector<1x256xf32>
      %66 = arith.mulf %64, %65 : vector<1x256xf32>
      %67 = arith.mulf %62, %62 : vector<8x256xf32>
      %cst_36 = arith.constant dense<0.000000e+00> : vector<256xf32>
      %68 = vector.multi_reduction <add>, %67, %cst_36 [0] : vector<8x256xf32> to vector<256xf32>
      %69 = vector.shape_cast %68 : vector<256xf32> to vector<1x256xf32>
      %cst_37 = arith.constant 1.250000e-01 : f32
      %70 = vector.broadcast %cst_37 : f32 to vector<1x256xf32>
      %71 = arith.mulf %69, %70 : vector<1x256xf32>
      %72 = arith.mulf %66, %66 : vector<1x256xf32>
      %73 = arith.subf %71, %72 : vector<1x256xf32>
      %cst_38 = arith.constant 9.99999974E-6 : f32
      %74 = vector.broadcast %cst_38 : f32 to vector<1x256xf32>
      %75 = arith.addf %73, %74 : vector<1x256xf32>
      %76 = math.rsqrt %75 : vector<1x256xf32>
      %77 = arith.mulf %76, %59 : vector<1x256xf32>
      %78 = arith.mulf %66, %77 : vector<1x256xf32>
      %79 = arith.subf %61, %78 : vector<1x256xf32>
      %80 = vector.broadcast %77 : vector<1x256xf32> to vector<8x256xf32>
      %81 = arith.mulf %62, %80 : vector<8x256xf32>
      %82 = vector.broadcast %79 : vector<1x256xf32> to vector<8x256xf32>
      %83 = arith.addf %81, %82 : vector<8x256xf32>
      %84 = arith.addf %83, %8 : vector<8x256xf32>
      %cst_39 = arith.constant 0.000000e+00 : f32
      %85 = vector.broadcast %cst_39 : f32 to vector<8x256xf32>
      %86 = arith.maximumf %84, %85 : vector<8x256xf32>
      %c0_40 = arith.constant 0 : index
      %c0_41 = arith.constant 0 : index
      %87 = vector.load %arg11[%c0_40, %c0_41] : memref<8x256xf32, #tpu.memory_space<vmem>>, vector<8x256xf32>
      tpu.vector_store %arg11[%c0_40, %c0_41], %86 {strides = array<i32>} : memref<8x256xf32, #tpu.memory_space<vmem>>, vector<8x256xf32>,
    } else {
    }
    %c1_i32_26 = arith.constant 1 : i32
    %54 = arith.cmpi eq, %arg0, %c1_i32_26 : i32
    %55 = arith.andi %51, %54 : i1
    %56 = arith.extui %55 : i1 to i32
    %c0_i32_27 = arith.constant 0 : i32
    %57 = arith.cmpi ne, %56, %c0_i32_27 : i32
    scf.if %57 {
      %c0_28 = arith.constant 0 : index
      %c0_29 = arith.constant 0 : index
      %58 = vector.load %arg11[%c0_28, %c0_29] : memref<8x256xf32, #tpu.memory_space<vmem>>, vector<8x256xf32>
      %59 = arith.truncf %58 : vector<8x256xf32> to vector<8x256xbf16>
      %c0_30 = arith.constant 0 : index
      %c0_31 = arith.constant 0 : index
      %60 = vector.load %arg8[%c0_30, %c0_31] : memref<256x128xbf16, #tpu.memory_space<vmem>>, vector<256x128xbf16>
      %cst_32 = arith.constant dense<0.000000e+00> : vector<8x128xf32>
      %61 = tpu.matmul %59, %60, %cst_32 {dimension_numbers = #tpu.dot_dimension_numbers<[1], [0], [0], [1], [0, 0, 1, 1], [], []>} : vector<8x256xbf16>, vector<256x128xbf16>, vector<8x128xf32> -> vector<8x128xf32>
      %c0_33 = arith.constant 0 : index
      %c0_34 = arith.constant 0 : index
      %62 = vector.load %arg9[%c0_33, %c0_34] : memref<1x128xf32, #tpu.memory_space<vmem>>, vector<1x128xf32>
      %63 = vector.broadcast %62 : vector<1x128xf32> to vector<8x128xf32>
      %64 = arith.addf %61, %63 : vector<8x128xf32>
      %c0_35 = arith.constant 0 : index
      %c0_36 = arith.constant 0 : index
      %65 = vector.load %arg10[%c0_35, %c0_36] : memref<8x128xf32, #tpu.memory_space<vmem>>, vector<8x128xf32>
      tpu.vector_store %arg10[%c0_35, %c0_36], %64 {strides = array<i32>} : memref<8x128xf32, #tpu.memory_space<vmem>>, vector<8x128xf32>,
    } else {
    }
    return
  }
  func.func @transform_0(%arg0: i32, %arg1: i32) -> (i32, i32) {
    %c0_i32 = arith.constant 0 : i32
    %c0_i32_0 = arith.constant 0 : i32
    %c0_i32_1 = arith.constant 0 : i32
    return %c0_i32, %c0_i32_0 : i32, i32
  }
  func.func @transform_1(%arg0: i32, %arg1: i32) -> (i32, i32) {
    %c0_i32 = arith.constant 0 : i32
    %c0_i32_0 = arith.constant 0 : i32
    %c0_i32_1 = arith.constant 0 : i32
    return %c0_i32, %c0_i32_0 : i32, i32
  }
  func.func @transform_2(%arg0: i32, %arg1: i32) -> (i32, i32) {
    %c0_i32 = arith.constant 0 : i32
    %c0_i32_0 = arith.constant 0 : i32
    %c0_i32_1 = arith.constant 0 : i32
    return %c0_i32, %c0_i32_0 : i32, i32
  }
  func.func @transform_3(%arg0: i32, %arg1: i32) -> (i32, i32, i32) {
    %c0_i32 = arith.constant 0 : i32
    %c0_i32_0 = arith.constant 0 : i32
    return %arg0, %c0_i32, %arg1 : i32, i32, i32
  }
  func.func @transform_4(%arg0: i32, %arg1: i32) -> (i32, i32, i32) {
    %c0_i32 = arith.constant 0 : i32
    %c0_i32_0 = arith.constant 0 : i32
    return %arg0, %arg1, %c0_i32 : i32, i32, i32
  }
  func.func @transform_5(%arg0: i32, %arg1: i32) -> (i32, i32, i32) {
    %c0_i32 = arith.constant 0 : i32
    %c0_i32_0 = arith.constant 0 : i32
    %c0_i32_1 = arith.constant 0 : i32
    return %arg0, %c0_i32, %c0_i32_0 : i32, i32, i32
  }
  func.func @transform_6(%arg0: i32, %arg1: i32) -> (i32, i32) {
    %c0_i32 = arith.constant 0 : i32
    %c0_i32_0 = arith.constant 0 : i32
    %c0_i32_1 = arith.constant 0 : i32
    return %c0_i32, %c0_i32_0 : i32, i32
  }
  func.func @transform_7(%arg0: i32, %arg1: i32) -> (i32, i32) {
    %c0_i32 = arith.constant 0 : i32
    %c0_i32_0 = arith.constant 0 : i32
    %c0_i32_1 = arith.constant 0 : i32
    return %c0_i32, %c0_i32_0 : i32, i32
  }
  func.func @transform_8(%arg0: i32, %arg1: i32) -> (i32, i32) {
    %c0_i32 = arith.constant 0 : i32
    %c0_i32_0 = arith.constant 0 : i32
    %c0_i32_1 = arith.constant 0 : i32
    return %c0_i32, %c0_i32_0 : i32, i32
  }
}

</mosaic_0001>

<bundles_post_ra>
// kernel: tpu_custom_call.1
= control target key start
LH: loop header
LB: loop body
LE: loop exit
PB: predicated region body
PF: predicated region fallthrough
CT: control target
= control target key end

     0   :  { %s2673_s0 = inlined_call_operand.hbm [shape: f32[8,128], index: 0, kind: input, shape index: {}]   ;;  %s2674_s1 = inlined_call_operand.hbm [shape: bf16[128,256], index: 1, kind: input, shape index: {}]   ;;  %s2675_s2 = inlined_call_operand.hbm [shape: f32[1,256], index: 2, kind: input, shape index: {}]   ;;  %s2676_s3 = inlined_call_operand.hbm [shape: bf16[2,256,256], index: 3, kind: input, shape index: {}]   ;;  %s2677_s4 = inlined_call_operand.hbm [shape: bf16[2,256,256], index: 4, kind: input, shape index: {}]   ;;  %s2678_s5 = inlined_call_operand.hbm [shape: f32[2,4,256], index: 5, kind: input, shape index: {}]   ;;  %s2679_s6 = inlined_call_operand.hbm [shape: bf16[256,128], index: 6, kind: input, shape index: {}]   ;;  %s2680_s7 = inlined_call_operand.vmem [shape: f32[1,128], index: 7, kind: input, shape index: {}]   ;;  %s2681_s8 = inlined_call_operand.hbm [shape: f32[8,128], index: 8, kind: output, shape index: {}]  }
   0x1   :  { %2694 = sst [smem:[#allocation29_spill]] %s2674_s1 }
   0x2   :  { %2695 = sst [smem:[#allocation30_spill]] %s2676_s3 }
   0x3   :  { %2696 = sst [smem:[#allocation31_spill]] %s2678_s5 }
   0x4   :  { %2697 = sst [smem:[#allocation32_spill]] %s2679_s6 }
   0x5   :  { %2698 = sst [smem:[#allocation33_spill]] %s2680_s7 }
   0x6   :  { %2699 = sst [smem:[#allocation34_spill]] %s2681_s8 }
   0x7   :  { %13 = vsyncpa [#allocation5], 0 }
   0x8   :  { %14 = vsyncpa [#allocation8], 0 }
   0x9   :  { %15 = vsyncpa [#allocation11], 0 }
   0xa   :  { %17 = vsyncpa [#allocation11 + $0x1], 0 }
   0xb   :  { %18 = vsyncpa [#allocation14], 0 }
   0xc   :  { %20 = vsyncpa [#allocation14 + $0x1], 0 }
   0xd   :  { %21 = vsyncpa [#allocation6], 0  ;;  %s2305_s27 = smov 0   ;;  %s2307_s28 = smov 0  }
   0xe   :  { %s2309_s29 = smov 0   ;;  %s2311_s30 = smov 0  }
   0xf   :  { %s2313_s9 = smov 0   ;;  %s2315_s10 = smov 0  }
  0x10   :  { %s2317_s11 = smov 0   ;;  %s2319_s12 = smov 0  }
  0x11   :  { %s2321_s13 = smov 0   ;;  %s2323_s14 = smov 0  }
  0x12   :  { %s2325_s15 = smov 0  }
  0x13 LB: > { %2700 = sst [smem:[#allocation23_spill]] %s2224_s9  ;;  %s2359_s16 = sadd.s32 4294967295, %s2248_s15   ;;  %s2248_s15 = sphi %s2325_s15, %s27_s15   ;;  %s2244_s14 = sphi %s2323_s14, %s2747_s14   ;;  %s2240_s13 = sphi %s2321_s13, %s2746_s13   ;;  %s2236_s12 = sphi %s2319_s12, %s2745_s12   ;;  %s2232_s11 = sphi %s2317_s11, %s2744_s11   ;;  %s2228_s10 = sphi %s2315_s10, %s2743_s10   ;;  %s2224_s9 = sphi %s2313_s9, %s2738_s9   ;;  %s2220_s30 = sphi %s2311_s30, %s2737_s30   ;;  %s2216_s29 = sphi %s2309_s29, %s2742_s29   ;;  %s2212_s28 = sphi %s2307_s28, %s2741_s28   ;;  %s2208_s27 = sphi %s2305_s27, %s2740_s27  }
  0x14   : > { %2701 = sst [smem:[#allocation24_spill]] %s2228_s10  ;;  %p124_p0 = scmp.ne.s32.totalorder %s2224_s9, %s2220_s30 }
  0x15   : > { %2702 = sst [smem:[#allocation25_spill]] %s2232_s11  ;;  %p125_p1 = scmp.eq.s32.totalorder %s2359_s16, 0 }
  0x16   : > { %2703 = sst [smem:[#allocation26_spill]] %s2236_s12  ;;  %p1378_p2 = scmp.ge.s32.totalorder %s2248_s15, 1 }
  0x17   : > { %p252_p3 = scmp.lt.s32.totalorder %s2248_s15, 5  ;;  %p2367_p4 = por %p125_p1, %p124_p0 }
  0x18   : > { %s2706_s1 = sld [smem:[#allocation29_spill]]  ;;  %s2250_s22 = smov [#allocation7]  }
  0x19   : > { %s2704_s17 = scalar_select %p2367_p4, 1, 0 }
  0x1a   : > { %p2374_p5 = pnand %p1378_p2, %p252_p3  ;;  %s277_s23 = sshll.u32 %s2250_s22, 4  ;;  %s278_s23 = int_to_ptr.vmem [resolvable:$true] %s277_s23 }
  0x1b   : > { %2705 = sst [smem:[#allocation27_spill]] %s2704_s17  ;;  %s2683_s18 = smov 128  }
  0x1c   : > { %s2707_s21 = scalar_select %p2374_p5, 1, 0 }
  0x1d   : > { %p1761_p6 = pneg %p2374_p5  ;;  %s2710_s6 = sld [smem:[#allocation32_spill]] }
  0x1e   : > { %s275_s20 = sshll.u32 %s2706_s1, 4  ;;  %2708 = sst [smem:[#allocation28_spill]] %s2707_s21  ;;  %s276_s20 = int_to_ptr.hbm [resolvable:$true] %s275_s20 }
  0x1f   : > { %p2382_p7 = pnand %p1761_p6, %p125_p1  ;;  %s2682_s19 = smov 8  }
  0x20   : > { %s2253_s22 = smov [#allocation15]   ;;  %s2685_s26 = smov 64  }
  0x21   : > { %1767 = dma.hbm_to_vmem [thread:$0]  (!%p2382_p7), %s276_s20, 2048, %s278_s23, [#allocation8], %s2683_s18, %s2683_s18, %s2682_s19  }
  0x22   : > { %s303_s25 = sshll.u32 %s2253_s22, 4  ;;  %s2686_s1 = smov 4   ;;  %s304_s25 = int_to_ptr.vmem [resolvable:$true] %s303_s25 }
  0x23   : > { %s301_s30 = sshll.u32 %s2710_s6, 4  ;;  %s36_s6 = sadd.s32 1, %s2240_s13  ;;  %s302_s30 = int_to_ptr.hbm [resolvable:$true] %s301_s30 }
  0x24   : > { %1773 = dma.hbm_to_vmem [thread:$0]  (!%p2382_p7), %s302_s30, 2048, %s304_s25, [#allocation14], %s2685_s26, %s2685_s26, %s2686_s1  }
  0x25   : > { %p2401_p8 = scmp.ge.s32.totalorder %s36_s6, 2  ;;  %p118_p9 = scmp.ne.s32.totalorder %s2228_s10, %s2224_s9 }
  0x26   : > { %p119_p10 = scmp.eq.s32.totalorder %s2248_s15, 0  ;;  %p1788_p12 = scmp.lt.s32.totalorder %s2248_s15, 4 }
  0x27   : > { %s2749_s6 = smov (%p2401_p8, %s36_s6), 0  ;;  %s320_s22 = sand.u32 1, %s2248_s15  }
  0x28   : > { %p2415_p11 = por %p119_p10, %p118_p9  ;;  %s322_s25 = sand.u32 1, %s2228_s10  }
  0x29   : > { %s1384_s8 = sshll.u32 %s322_s25, 7  ;;  %s1385_s20 = sshll.u32 %s2244_s14, 6 }
  0x2a   : > { %s328_s19 = sadd.s32 %s2240_s13, %s1385_s20  ;;  %s324_s26 = scalar_lea.vmem [#allocation10], %s1384_s8 }
  0x2b   : > { %s1386_s18 = sshll.u32 %s328_s19, 2  ;;  %s333_s1 = sshll.u32 %s324_s26, 4  ;;  %s334_s1 = int_to_ptr.vmem [resolvable:$true] %s333_s1 }
  0x2c   : > { %s2713_s3 = sld [smem:[#allocation30_spill]]  ;;  %p2433_p13 = pnand %p1788_p12, %p2415_p11 }
  0x2d   : > { %s321_s19 = scalar_lea.sflag [#allocation11], %s320_s22  ;;  %s2715_s26 = smov 4  }
  0x2e   : > { %s2716_s25 = smov 64   ;;  %s2717_s21 = smov 128  }
  0x2f   : > { %s290_s10 = sshll.u32 %s2675_s2, 4  ;;  %s347_s5 = scalar_lea.vmem [#allocation12], %s1384_s8  ;;  %s291_s10 = int_to_ptr.hbm [resolvable:$true] %s290_s10 }
  0x30   : > { %s2718_s24 = smov 8   ;;  %s165_s8 = sadd.s32 1, %s2216_s29 }
  0x31   : > { %p172_p0 = scmp.ne.s32.totalorder %s2216_s29, %s2212_s28  ;;  %p178_p2 = scmp.ne.s32.totalorder %s2212_s28, %s2208_s27 }
  0x32   : > { %s330_s17 = scalar_lea.hbm %s2713_s3, %s1386_s18  ;;  %s2256_s18 = smov [#allocation4]  }
  0x33   : > { %s331_s9 = sshll.u32 %s330_s17, 4  ;;  %s264_s17 = sshll.u32 %s2673_s0, 4  ;;  %s332_s9 = int_to_ptr.hbm [resolvable:$true] %s331_s9  ;;  %s265_s17 = int_to_ptr.hbm [resolvable:$true] %s264_s17 }
  0x34   : > { %1777 = dma.hbm_to_vmem [thread:$0]  (!%p2433_p13), %s332_s9, 2048, %s334_s1, %s321_s19, %s2717_s21, %s2716_s25, %s2715_s26  }
  0x35   : > { %s266_s23 = sshll.u32 %s2256_s18, 4  ;;  %s2257_s1 = smov [#allocation9]   ;;  %s267_s23 = int_to_ptr.vmem [resolvable:$true] %s266_s23 }
  0x36   : > { %1764 = dma.hbm_to_vmem [thread:$0]  (!%p2382_p7), %s265_s17, 128, %s267_s23, [#allocation5]  }
  0x37   : > { %s292_s9 = sshll.u32 %s2257_s1, 4  ;;  %s1669_s26 = sshll.u32 %s2240_s13, 5  ;;  %s293_s9 = int_to_ptr.vmem [resolvable:$true] %s292_s9 }
  0x38   : > { %1770 = dma.hbm_to_vmem [thread:$0]  (!%p2382_p7), %s291_s10, 32, %s293_s9, [#allocation8]  }
  0x39   : > { %s353_s3 = sadd.s32 %s1669_s26, %s1385_s20  ;;  %s358_s25 = sshll.u32 %s347_s5, 4  ;;  %s359_s25 = int_to_ptr.vmem [resolvable:$true] %s358_s25 }
  0x3a   : > { %s1391_s11 = sshll.u32 %s353_s3, 2  ;;  %s2719_s10 = sadd.s32 1, %s2244_s14 }
  0x3b   : > { %s355_s18 = scalar_lea.hbm %s2677_s4, %s1391_s11  ;;  %s2720_s20 = sld [smem:[#allocation24_spill]] }
  0x3c   : > { %s356_s23 = sshll.u32 %s355_s18, 4  ;;  %s2751_s10 = smov (!%p2401_p8, %s2719_s10), %s2244_s14  ;;  %s357_s23 = int_to_ptr.hbm [resolvable:$true] %s356_s23 }
  0x3d   : > { %1780 = dma.hbm_to_vmem [thread:$0]  (!%p2433_p13), %s357_s23, 2048, %s359_s25, %s321_s19, %s2717_s21, %s2717_s21, %s2718_s24  }
  0x3e   : > { %p41_p3 = scmp.ge.s32.totalorder %s2751_s10, 2  ;;  %p2475_p6 = por %p172_p0, %p119_p10 }
  0x3f   : > { %p2481_p7 = por %p178_p2, %p125_p1  ;;  %s370_s7 = sand.u32 1, %s2216_s29  }
  0x40   : > { %s2753_s10 = smov (%p41_p3, %s2751_s10), 0  ;;  %s1670_s21 = sshll.u32 %s2244_s14, 3 }
  0x41   : > { %s106_s27 = ssub.s32 %s2244_s14, %s2753_s10  ;;  %s1392_s19 = sshll.u32 %s370_s7, 3 }
  0x42   : > { %s2723_s9 = ssub.s32 %s2240_s13, %s2749_s6  ;;  %p163_p8 = scmp.eq.s32.totalorder %s106_s27, 0 }
  0x43   : > { %s108_s26 = sor.u32 %s2723_s9, %s106_s27  ;;  %s2724_s5 = sadd.s32 1, %s2720_s20 }
  0x44   : > { %p109_p9 = scmp.eq.s32.totalorder %s108_s26, 0  ;;  %s2725_s12 = sld [smem:[#allocation31_spill]] }
  0x45   : > { %s2495_s3 = scalar_select %p163_p8, %s2216_s29, %s165_s8  }
  0x46   : > { %s2755_s20 = smov (!%p109_p9, %s2720_s20), %s2724_s5  ;;  %s372_s18 = scalar_lea.vmem [#allocation13], %s1392_s19 }
  0x47   : > { %s381_s23 = sshll.u32 %s372_s18, 4  ;;  %p1781_p10 = pnand %p1788_p12, %p2475_p6  ;;  %s382_s23 = int_to_ptr.vmem [resolvable:$true] %s381_s23 }
  0x48   : > { %s369_s7 = scalar_lea.sflag [#allocation14], %s320_s22  ;;  %390 = sbr.rel (%p2374_p5) target bundleno = 902 (0x386), region = 52 }
  0x4a   : > { %s377_s17 = scalar_lea.hbm %s2725_s12, %s1670_s21 }
  0x4b   : > { %s379_s24 = sshll.u32 %s377_s17, 4  ;;  %s380_s24 = int_to_ptr.hbm [resolvable:$true] %s379_s24 }
  0x4c   : > { %1783 = dma.hbm_to_vmem [thread:$0]  (!%p1781_p10), %s380_s24, 128, %s382_s23, %s369_s7  }
  0x4d   : > { %2183 = dma.done.wait (%p125_p1), [#allocation5], 128  }
  0x4e   : > { %2185 = vsyncadd (%p125_p1), [#allocation5], 4294967168 }
  0x4f   : > { %2187 = dma.done.wait (%p125_p1), [#allocation8], 2080  }
  0x50   : > { %2189 = vsyncadd (%p125_p1), [#allocation8], 4294965216  ;;  %s2727_s1 = sld [smem:[#allocation23_spill]]  ;;  %s407_s22 = sand.u32 1, %s2359_s16  }
  0x51   : > { %s408_s9 = scalar_lea.sflag [#allocation11], %s407_s22 }
  0x56   : > { %s409_s27 = sand.u32 1, %s2727_s1  }
  0x57   : > { %s1399_s19 = sshll.u32 %s409_s27, 7 }
  0x58   : > { %s2523_s26 = scalar_lea.vmem [#allocation10], %s1399_s19 }
  0x59   : > { %2191 = dma.done.wait (%p2367_p4), %s408_s9, 4096  }
  0x5a   : > { %2193 = vsyncadd (%p2367_p4), %s408_s9, 4294963200  ;;  %s429_s5 = sand.u32 1, %s2212_s28   ;;  %s2530_s11 = scalar_lea.vmem [#allocation12], %s1399_s19 }
  0x5b   : > { %s1401_s25 = sshll.u32 %s429_s5, 3  ;;  %s428_s12 = scalar_lea.sflag [#allocation14], %s407_s22 }
  0x5c   : > { %s2532_s17 = scalar_lea.vmem [#allocation13], %s1401_s25 }
  0x5d   : > { %2195 = dma.done.wait (%p2481_p7), %s428_s12, 128  }
  0x5e   : > { %2197 = vsyncadd (%p2481_p7), %s428_s12, 4294967168 }
  0x5f   : > { %2199 = dma.done.wait (%p125_p1), [#allocation14], 2048  }
  0x60   : > { %2201 = vsyncadd (%p125_p1), [#allocation14], 4294965248  ;;  %s2729_s18 = sld [smem:[#allocation26_spill]] }
  0x61   : > { %s2730_s23 = sld [smem:[#allocation25_spill]] }
  0x66   : > { %p476_p4 = scmp.eq.s32.totalorder %s2729_s18, 0 }
  0x67   : > { %p477_p5 = scmp.eq.s32.totalorder %s2730_s23, 0 }
  0x69   : > { %p478_p11 = pnand %p477_p5, %p476_p4 }
  0x6b   : > { %481 = sbr.rel (%p478_p11) target bundleno = 281 (0x119), region = 84 }
  0x70   : > { %v1461_v0 = vld [vmem:[#allocation7 + $0x70] sm:$0xf]  ;;  %v1686_v1 = vld [vmem:[#allocation7 + $0x74] sm:$0xf0]  ;;  %v1685_v2 = vld [vmem:[#allocation7 + $0x74] sm:$0xf] }
  0x71   : > { %v1462_v3 = vor.u32 %v1686_v1, %v1461_v0  ;;  %v1463_v4 = vld [vmem:[#allocation7 + $0x78] sm:$0xf0]  ;;  %v1453_v5 = vld [vmem:[#allocation7 + $0x60] sm:$0xf]  ;;  %v1684_v6 = vld [vmem:[#allocation7 + $0x64] sm:$0xf0] }
  0x72   : > { %v1466_v7 = vor.u32 %v1685_v2, %v1463_v4  ;;  %v1683_v8 = vld [vmem:[#allocation7 + $0x64] sm:$0xf]  ;;  %v1455_v9 = vld [vmem:[#allocation7 + $0x68] sm:$0xf0]  ;;  %v1454_v10 = vor.u32 %v1684_v6, %v1453_v5  ;;  %v1445_v12 = vld [vmem:[#allocation7 + $0x50] sm:$0xf] }
  0x73   : > { %586 = vmatpush.bf16.msra.mxu0 %v1462_v3  ;;  %v1458_v11 = vor.u32 %v1683_v8, %v1455_v9  ;;  %v1682_v13 = vld [vmem:[#allocation7 + $0x54] sm:$0xf0]  ;;  %v1681_v14 = vld [vmem:[#allocation7 + $0x54] sm:$0xf]  ;;  %v1447_v15 = vld [vmem:[#allocation7 + $0x58] sm:$0xf0] }
  0x74   : > { %599 = vmatpush.bf16.msra.mxu1 %v1466_v7  ;;  %v1446_v16 = vor.u32 %v1682_v13, %v1445_v12  ;;  %v1450_v17 = vor.u32 %v1681_v14, %v1447_v15  ;;  %v1437_v18 = vld [vmem:[#allocation7 + $0x40] sm:$0xf]  ;;  %v1680_v19 = vld [vmem:[#allocation7 + $0x44] sm:$0xf0]  ;;  %v1679_v20 = vld [vmem:[#allocation7 + $0x44] sm:$0xf] }
  0x75   : > { %v1439_v21 = vld [vmem:[#allocation7 + $0x48] sm:$0xf0]  ;;  %v1438_v22 = vor.u32 %v1680_v19, %v1437_v18  ;;  %v1429_v24 = vld [vmem:[#allocation7 + $0x30] sm:$0xf]  ;;  %v1678_v25 = vld [vmem:[#allocation7 + $0x34] sm:$0xf0] }
  0x76   : > { %v1442_v23 = vor.u32 %v1679_v20, %v1439_v21  ;;  %v1677_v26 = vld [vmem:[#allocation7 + $0x34] sm:$0xf]  ;;  %v1431_v27 = vld [vmem:[#allocation7 + $0x38] sm:$0xf0]  ;;  %v1430_v28 = vor.u32 %v1678_v25, %v1429_v24  ;;  %v1421_v30 = vld [vmem:[#allocation7 + $0x20] sm:$0xf] }
  0x77   : > { %587 = vmatpush.bf16.msra.mxu0 %v1454_v10  ;;  %v1434_v29 = vor.u32 %v1677_v26, %v1431_v27  ;;  %v1676_v31 = vld [vmem:[#allocation7 + $0x24] sm:$0xf0]  ;;  %v1675_v32 = vld [vmem:[#allocation7 + $0x24] sm:$0xf]  ;;  %v1423_v33 = vld [vmem:[#allocation7 + $0x28] sm:$0xf0] }
  0x78   : > { %600 = vmatpush.bf16.msra.mxu1 %v1458_v11  ;;  %v1422_v34 = vor.u32 %v1676_v31, %v1421_v30  ;;  %v1426_v35 = vor.u32 %v1675_v32, %v1423_v33  ;;  %v1413_v36 = vld [vmem:[#allocation7 + $0x10] sm:$0xf]  ;;  %v1674_v37 = vld [vmem:[#allocation7 + $0x14] sm:$0xf0]  ;;  %v1673_v38 = vld [vmem:[#allocation7 + $0x14] sm:$0xf] }
  0x79   : > { %v1415_v39 = vld [vmem:[#allocation7 + $0x18] sm:$0xf0]  ;;  %v1414_v40 = vor.u32 %v1674_v37, %v1413_v36  ;;  %v1405_v42 = vld [vmem:[#allocation7] sm:$0xf]  ;;  %v1672_v43 = vld [vmem:[#allocation7 + $0x4] sm:$0xf0] }
  0x7a   : > { %v1418_v41 = vor.u32 %v1673_v38, %v1415_v39  ;;  %v1671_v44 = vld [vmem:[#allocation7 + $0x4] sm:$0xf]  ;;  %v1407_v45 = vld [vmem:[#allocation7 + $0x8] sm:$0xf0]  ;;  %v1406_v46 = vor.u32 %v1672_v43, %v1405_v42  ;;  %v482_v47 = vld [vmem:[#allocation4] sm:$0xff] }
  0x7b   : > { %588 = vmatpush.bf16.msra.mxu0 %v1446_v16  ;;  %v1410_v48 = vor.u32 %v1671_v44, %v1407_v45  ;;  %v483_v49 = vpack.c.bf16 %v482_v47, %v482_v47  ;;  %v500_v50 = vld [vmem:[#allocation9] sm:$0x3] }
  0x7c   : > { %601 = vmatpush.bf16.msra.mxu1 %v1450_v17  ;;  %v502_v51 = vperm.slane %v500_v50, 0  ;;  %v503_v52 = vperm.slane %v500_v50, 1 }
  0x7f   : > { %589 = vmatpush.bf16.msra.mxu0 %v1438_v22 }
  0x80   : > { %602 = vmatpush.bf16.msra.mxu1 %v1442_v23 }
  0x83   : > { %590 = vmatpush.bf16.msra.mxu0 %v1430_v28 }
  0x84   : > { %603 = vmatpush.bf16.msra.mxu1 %v1434_v29 }
  0x87   : > { %591 = vmatpush.bf16.msra.mxu0 %v1422_v34 }
  0x88   : > { %604 = vmatpush.bf16.msra.mxu1 %v1426_v35 }
  0x8b   : > { %592 = vmatpush.bf16.msra.mxu0 %v1414_v40 }
  0x8c   : > { %605 = vmatpush.bf16.msra.mxu1 %v1418_v41 }
  0x8f   : > { %593 = vmatpush.bf16.msra.mxu0 %v1406_v46 }
  0x90   : > { %606 = vmatpush.bf16.msra.mxu1 %v1410_v48 }
  0x92   : > { %594 = vmatmul.bf16.vlgmr.msra.gmra.mxu0 %v483_v49 }
  0x93   : > { %607 = vmatmul.bf16.vlgmr.msra.gmra.mxu1 %v483_v49 }
 0x10f   : > { %v595_v53 = vpop.f32.mrf.mxu0 }
 0x110   : > { %v596_v54 = vadd.f32 %v595_v53, %v502_v51  ;;  %v608_v55 = vpop.f32.mrf.mxu1 }
 0x111   : > { %v609_v56 = vadd.f32 %v608_v55, %v503_v52 }
 0x112   : > { %612 = vst [vmem:[#allocation2] sm:$0xff] %v596_v54 }
 0x113   : > { %613 = vst [vmem:[#allocation2 + $0x8] sm:$0xff] %v609_v56 }
 0x117   : > { %v597_v57 = vpop.f32.mrf.mxu0 }
 0x118   : > { %v610_v58 = vpop.f32.mrf.mxu1 }
 0x119 PF: > { %s2731_s30 = sld [smem:[#allocation25_spill]] }
 0x11f   : > { %p1467_p1 = scmp.ne.s32.totalorder %s2731_s30, 0 }
 0x121   : > { %616 = sbr.rel (%p1467_p1) target bundleno = 297 (0x129), region = 88 }
 0x126   : > { %v2258_v59 = vmov 0.0  }
 0x127   : > { %617 = vst [vmem:[#allocation3 + $0x8] sm:$0xff] %v2258_v59 }
 0x128   : > { %618 = vst [vmem:[#allocation3] sm:$0xff] %v2258_v59 }
 0x129 PF: > { %v1694_v60 = vld [vmem:[%s2523_s26 + $0x38] sm:$0xff]  ;;  %v1693_v62 = vld [vmem:[%s2523_s26 + $0x30] sm:$0xff]  ;;  %v1692_v0 = vld [vmem:[%s2523_s26 + $0x28] sm:$0xff]  ;;  %s2732_s24 = sld [smem:[#allocation25_spill]] }
 0x12a   : > { %v1702_v61 = vld [vmem:[%s2523_s26 + $0x78] sm:$0xff]  ;;  %758 = vmatpush.bf16.msra.mxu0 %v1694_v60  ;;  %v1701_v63 = vld [vmem:[%s2523_s26 + $0x70] sm:$0xff]  ;;  %v1700_v1 = vld [vmem:[%s2523_s26 + $0x68] sm:$0xff] }
 0x12b   : > { %771 = vmatpush.bf16.msra.mxu1 %v1702_v61  ;;  %v1691_v2 = vld [vmem:[%s2523_s26 + $0x20] sm:$0xff]  ;;  %v1690_v4 = vld [vmem:[%s2523_s26 + $0x18] sm:$0xff]  ;;  %v1689_v6 = vld [vmem:[%s2523_s26 + $0x10] sm:$0xff] }
 0x12c   : > { %v1699_v3 = vld [vmem:[%s2523_s26 + $0x60] sm:$0xff]  ;;  %v1698_v5 = vld [vmem:[%s2523_s26 + $0x58] sm:$0xff]  ;;  %v1697_v7 = vld [vmem:[%s2523_s26 + $0x50] sm:$0xff] }
 0x12d   : > { %v1688_v8 = vld [vmem:[%s2523_s26 + $0x8] sm:$0xff]  ;;  %v1687_v10 = vld [vmem:[%s2523_s26] sm:$0xff]  ;;  %v2561_v12 = vld [vmem:[#allocation2] sm:$0xff] }
 0x12e   : > { %759 = vmatpush.bf16.msra.mxu0 %v1693_v62  ;;  %v1696_v9 = vld [vmem:[%s2523_s26 + $0x48] sm:$0xff]  ;;  %v1695_v11 = vld [vmem:[%s2523_s26 + $0x40] sm:$0xff]  ;;  %v621_v14 = vpack.c.bf16 %v2561_v12, %v2561_v12  ;;  %v1592_v16 = vld [vmem:[%s2530_s11 + $0x70] sm:$0xf] }
 0x12f   : > { %772 = vmatpush.bf16.msra.mxu1 %v1701_v63  ;;  %v2563_v13 = vld [vmem:[#allocation2 + $0x8] sm:$0xff]  ;;  %v1718_v17 = vld [vmem:[%s2530_s11 + $0x74] sm:$0xf0]  ;;  %v1717_v18 = vld [vmem:[%s2530_s11 + $0x74] sm:$0xf]  ;;  %s1468_s7 = sshll.u32 %s2732_s24, 7 }
 0x130   : > { %v622_v15 = vpack.c.bf16 %v2563_v13, %v2563_v13  ;;  %v1593_v19 = vor.u32 %v1718_v17, %v1592_v16  ;;  %v1594_v20 = vld [vmem:[%s2530_s11 + $0x78] sm:$0xf0]  ;;  %v1584_v21 = vld [vmem:[%s2530_s11 + $0x60] sm:$0xf]  ;;  %v1716_v22 = vld [vmem:[%s2530_s11 + $0x64] sm:$0xf0] }
 0x131   : > { %v1597_v23 = vor.u32 %v1717_v18, %v1594_v20  ;;  %v1715_v24 = vld [vmem:[%s2530_s11 + $0x64] sm:$0xf]  ;;  %v1586_v25 = vld [vmem:[%s2530_s11 + $0x68] sm:$0xf0]  ;;  %v1585_v26 = vor.u32 %v1716_v22, %v1584_v21  ;;  %v1576_v28 = vld [vmem:[%s2530_s11 + $0x50] sm:$0xf] }
 0x132   : > { %760 = vmatpush.bf16.msra.mxu0 %v1692_v0  ;;  %919 = vmatpush.bf16.msra.mxu2 %v1593_v19  ;;  %v1589_v27 = vor.u32 %v1715_v24, %v1586_v25  ;;  %v1714_v29 = vld [vmem:[%s2530_s11 + $0x54] sm:$0xf0]  ;;  %v1713_v30 = vld [vmem:[%s2530_s11 + $0x54] sm:$0xf]  ;;  %v1578_v31 = vld [vmem:[%s2530_s11 + $0x58] sm:$0xf0] }
 0x133   : > { %773 = vmatpush.bf16.msra.mxu1 %v1700_v1  ;;  %932 = vmatpush.bf16.msra.mxu3 %v1597_v23  ;;  %v1577_v32 = vor.u32 %v1714_v29, %v1576_v28  ;;  %v1581_v33 = vor.u32 %v1713_v30, %v1578_v31  ;;  %v1568_v34 = vld [vmem:[%s2530_s11 + $0x40] sm:$0xf]  ;;  %v1712_v35 = vld [vmem:[%s2530_s11 + $0x44] sm:$0xf0]  ;;  %v1711_v36 = vld [vmem:[%s2530_s11 + $0x44] sm:$0xf] }
 0x134   : > { %v1570_v37 = vld [vmem:[%s2530_s11 + $0x48] sm:$0xf0]  ;;  %v1569_v38 = vor.u32 %v1712_v35, %v1568_v34  ;;  %v1560_v40 = vld [vmem:[%s2530_s11 + $0x30] sm:$0xf]  ;;  %v1710_v41 = vld [vmem:[%s2530_s11 + $0x34] sm:$0xf0] }
 0x135   : > { %v1573_v39 = vor.u32 %v1711_v36, %v1570_v37  ;;  %v1709_v42 = vld [vmem:[%s2530_s11 + $0x34] sm:$0xf]  ;;  %v1562_v43 = vld [vmem:[%s2530_s11 + $0x38] sm:$0xf0]  ;;  %v1561_v44 = vor.u32 %v1710_v41, %v1560_v40  ;;  %v1552_v46 = vld [vmem:[%s2530_s11 + $0x20] sm:$0xf] }
 0x136   : > { %761 = vmatpush.bf16.msra.mxu0 %v1691_v2  ;;  %920 = vmatpush.bf16.msra.mxu2 %v1585_v26  ;;  %v1565_v45 = vor.u32 %v1709_v42, %v1562_v43  ;;  %v1708_v47 = vld [vmem:[%s2530_s11 + $0x24] sm:$0xf0]  ;;  %v1707_v50 = vld [vmem:[%s2530_s11 + $0x24] sm:$0xf]  ;;  %v1554_v51 = vld [vmem:[%s2530_s11 + $0x28] sm:$0xf0] }
 0x137   : > { %774 = vmatpush.bf16.msra.mxu1 %v1699_v3  ;;  %933 = vmatpush.bf16.msra.mxu3 %v1589_v27  ;;  %v1553_v53 = vor.u32 %v1708_v47, %v1552_v46  ;;  %v1557_v56 = vor.u32 %v1707_v50, %v1554_v51  ;;  %v1544_v57 = vld [vmem:[%s2530_s11 + $0x10] sm:$0xf]  ;;  %v1706_v58 = vld [vmem:[%s2530_s11 + $0x14] sm:$0xf0]  ;;  %v1705_v59 = vld [vmem:[%s2530_s11 + $0x14] sm:$0xf] }
 0x138   : > { %v1546_v60 = vld [vmem:[%s2530_s11 + $0x18] sm:$0xf0]  ;;  %v1545_v63 = vor.u32 %v1706_v58, %v1544_v57  ;;  %v1536_v3 = vld [vmem:[%s2530_s11] sm:$0xf]  ;;  %s624_s8 = sshra.s32 %s1468_s7, 7  ;;  %p949_p12 = scmp.eq.s32.totalorder %s2732_s24, 1 }
 0x139   : > { %v1549_v2 = vor.u32 %v1705_v59, %v1546_v60  ;;  %s1469_s1 = sshll.u32 %s624_s8, 2  ;;  %v820_v43 = vld [vmem:[#allocation3 + $0x8] sm:$0xff]  ;;  %p1598_p13 = scmp.ne.s32.totalorder %s2732_s24, 1 }
 0x13a   : > { %762 = vmatpush.bf16.msra.mxu0 %v1690_v4  ;;  %921 = vmatpush.bf16.msra.mxu2 %v1577_v32  ;;  %v1704_v4 = vld [vmem:[%s2530_s11 + $0x4] sm:$0xf0]  ;;  %s627_s21 = scalar_lea.vmem %s2532_s17, %s1469_s1 [#allocation13] }
 0x13b   : > { %775 = vmatpush.bf16.msra.mxu1 %v1698_v5  ;;  %934 = vmatpush.bf16.msra.mxu3 %v1581_v33  ;;  %v628_v30 = vld [vmem:[%s627_s21] sm:$0x1]  ;;  %v629_v34 = vld [vmem:[%s627_s21 + $0x1] sm:$0x1] }
 0x13e   : > { %763 = vmatpush.bf16.msra.mxu0 %v1689_v6  ;;  %922 = vmatpush.bf16.msra.mxu2 %v1569_v38 }
 0x13f   : > { %776 = vmatpush.bf16.msra.mxu1 %v1697_v7  ;;  %935 = vmatpush.bf16.msra.mxu3 %v1573_v39  ;;  %v1703_v7 = vld [vmem:[%s2530_s11 + $0x4] sm:$0xf] }
 0x142   : > { %764 = vmatpush.bf16.msra.mxu0 %v1688_v8  ;;  %923 = vmatpush.bf16.msra.mxu2 %v1561_v44  ;;  %v1538_v8 = vld [vmem:[%s2530_s11 + $0x8] sm:$0xf0] }
 0x143   : > { %777 = vmatpush.bf16.msra.mxu1 %v1696_v9  ;;  %936 = vmatpush.bf16.msra.mxu3 %v1565_v45  ;;  %v821_v44 = vld [vmem:[#allocation3] sm:$0xff] }
 0x146   : > { %765 = vmatpush.bf16.msra.mxu0 %v1687_v10  ;;  %924 = vmatpush.bf16.msra.mxu2 %v1553_v53 }
 0x147   : > { %778 = vmatpush.bf16.msra.mxu1 %v1695_v11  ;;  %937 = vmatpush.bf16.msra.mxu3 %v1557_v56  ;;  %v1537_v11 = vor.u32 %v1704_v4, %v1536_v3 }
 0x149   : > { %766 = vmatmul.bf16.vlgmr.msra.gmra.mxu0 %v621_v14 }
 0x14a   : > { %779 = vmatmul.bf16.vlgmr.msra.gmra.mxu1 %v622_v15  ;;  %925 = vmatpush.bf16.msra.mxu2 %v1545_v63  ;;  %v1541_v15 = vor.u32 %v1703_v7, %v1538_v8 }
 0x14b   : > { %938 = vmatpush.bf16.msra.mxu3 %v1549_v2 }
 0x14e   : > { %926 = vmatpush.bf16.msra.mxu2 %v1537_v11 }
 0x14f   : > { %939 = vmatpush.bf16.msra.mxu3 %v1541_v15 }
 0x1c6   : > { %v767_v48 = vpop.f32.mrf.mxu0 }
 0x1c7   : > { %v780_v49 = vpop.f32.mrf.mxu1 }
 0x1c8   : > { %v2593_v52 = vadd.f32 %v780_v49, %v767_v48 }
 0x1ca   : > { %v784_v54 = vrot.slane %v2593_v52, 4  ;;  %v791_v55 = vmul.f32 %v2593_v52, %v2593_v52 }
 0x1cc   : > { %v785_v61 = vadd.f32 %v784_v54, %v2593_v52  ;;  %v792_v62 = vrot.slane %v791_v55, 4 }
 0x1ce   : > { %v786_v0 = vrot.slane %v785_v61, 2  ;;  %v793_v1 = vadd.f32 %v792_v62, %v791_v55  ;;  %v769_v5 = vpop.f32.mrf.mxu0 }
 0x1cf   : > { %v782_v6 = vpop.f32.mrf.mxu1 }
 0x1d0   : > { %v787_v9 = vadd.f32 %v786_v0, %v785_v61  ;;  %v794_v10 = vrot.slane %v793_v1, 2 }
 0x1d2   : > { %v795_v14 = vadd.f32 %v794_v10, %v793_v1  ;;  %v788_v16 = vrot.slane %v787_v9, 1 }
 0x1d4   : > { %v796_v17 = vrot.slane %v795_v14, 1  ;;  %v789_v18 = vadd.f32 %v788_v16, %v787_v9 }
 0x1d6   : > { %v797_v19 = vadd.f32 %v796_v17, %v795_v14  ;;  %v790_v20 = vmul.f32 0.125, %v789_v18 }
 0x1d8   : > { %v798_v21 = vmul.f32 0.125, %v797_v19  ;;  %v799_v22 = vmul.f32 %v790_v20, %v790_v20 }
 0x1da   : > { %v800_v23 = vsub.f32 %v798_v21, %v799_v22 }
 0x1dc   : > { %v801_v24 = vadd.f32 1e-05, %v800_v23 }
 0x1de   : > { %1893 = vrsqrt.f32 %v801_v24  ;;  %vm808_vm1 = vweird.f32 %v801_v24 }
 0x1e4   : > { %v1894_v25 = vpop.eup %1893 }
 0x1e5   : > { %v803_v26 = vmul.f32 %v1894_v25, %v801_v24  ;;  %vm809_vm0 = vweird.f32 %v1894_v25 }
 0x1e6   : > { %vm810_vm2 = vmor %vm808_vm1, %vm809_vm0 }
 0x1e7   : > { %v804_v27 = vmul.f32 %v1894_v25, %v803_v26 }
 0x1e9   : > { %v805_v28 = vmul.f32 0.5, %v804_v27 }
 0x1eb   : > { %v806_v29 = vsub.f32 1.5, %v805_v28 }
 0x1ed   : > { %v807_v31 = vmul.f32 %v1894_v25, %v806_v29 }
 0x1ef   : > { %v811_v32 = vsel %vm810_vm2, %v1894_v25, %v807_v31 }
 0x1f0   : > { %v812_v33 = vmul.f32 %v811_v32, %v628_v30 }
 0x1f2   : > { %v813_v35 = vmul.f32 %v812_v33, %v790_v20  ;;  %v815_v36 = vperm.slane %v812_v33, 0 }
 0x1f4   : > { %v814_v37 = vsub.f32 %v629_v34, %v813_v35  ;;  %v816_v38 = vmul.f32 %v815_v36, %v2593_v52 }
 0x1f6   : > { %v817_v39 = vperm.slane %v814_v37, 0 }
 0x1f8   : > { %v818_v40 = vadd.f32 %v817_v39, %v816_v38 }
 0x1fa   : > { %v819_v41 = vmax.f32 %v818_v40, 0.0 }
 0x1fc   : > { %v822_v42 = vpack.c.bf16 %v819_v41, %v819_v41 }
 0x1fe   : > { %927 = vmatmul.bf16.vlgmr.msra.gmra.mxu2 %v822_v42  ;;  %940 = vmatmul.bf16.vlgmr.msra.gmra.mxu3 %v822_v42 }
 0x281   : > { %v928_v45 = vpop.f32.mrf.mxu2  ;;  %v941_v46 = vpop.f32.mrf.mxu3 }
 0x282   : > { %v945_v47 = vadd.f32 %v928_v45, %v820_v43  ;;  %v946_v48 = vadd.f32 %v941_v46, %v821_v44 }
 0x284   : > { %947 = vst [vmem:[#allocation3 + $0x8] sm:$0xff] %v945_v47 }
 0x285   : > { %948 = vst [vmem:[#allocation3] sm:$0xff] %v946_v48  ;;  %952 = sbr.rel (%p1598_p13) target bundleno = 710 (0x2c6), region = 92 }
 0x289   : > { %v930_v49 = vpop.f32.mrf.mxu2  ;;  %v943_v50 = vpop.f32.mrf.mxu3 }
 0x28a   : > { %v1599_v34 = vld [vmem:[%s2532_s17 + $0x2] ss:$4 sm:$0x3]  ;;  %vm1027_vm9 = vcmask 1040384  }
 0x28b   : > { %v2612_v51 = vld [vmem:[#allocation3 + $0x8] sm:$0xff]  ;;  %v1016_v38 = vperm.slane %v1599_v34, 0  ;;  %v1017_v40 = vperm.slane %v1599_v34, 1 }
 0x28c   : > { %v2614_v52 = vld [vmem:[#allocation3] sm:$0xff]  ;;  %v959_v53 = vrot.slane %v2612_v51, 4  ;;  %v973_v55 = vmul.f32 %v2612_v51, %v2612_v51 }
 0x28d   : > { %v965_v54 = vrot.slane %v2614_v52, 4  ;;  %v974_v56 = vmul.f32 %v2614_v52, %v2614_v52  ;;  %v1600_v50 = vld [vmem:[%s2532_s17 + $0x3] ss:$4 sm:$0x3] }
 0x28e   : > { %v960_v57 = vadd.f32 %v959_v53, %v2612_v51  ;;  %v975_v59 = vrot.slane %v973_v55, 4 }
 0x28f   : > { %v966_v58 = vadd.f32 %v965_v54, %v2614_v52  ;;  %v981_v60 = vrot.slane %v974_v56, 4 }
 0x290   : > { %v961_v61 = vrot.slane %v960_v57, 2  ;;  %v976_v63 = vadd.f32 %v975_v59, %v973_v55 }
 0x291   : > { %v967_v62 = vrot.slane %v966_v58, 2  ;;  %v982_v0 = vadd.f32 %v981_v60, %v974_v56 }
 0x292   : > { %v962_v1 = vadd.f32 %v961_v61, %v960_v57  ;;  %v977_v3 = vrot.slane %v976_v63, 2 }
 0x293   : > { %v968_v2 = vadd.f32 %v967_v62, %v966_v58  ;;  %v983_v4 = vrot.slane %v982_v0, 2 }
 0x294   : > { %v963_v5 = vrot.slane %v962_v1, 1  ;;  %v978_v7 = vadd.f32 %v977_v3, %v976_v63 }
 0x295   : > { %v969_v6 = vrot.slane %v968_v2, 1  ;;  %v984_v8 = vadd.f32 %v983_v4, %v982_v0 }
 0x296   : > { %v964_v9 = vadd.f32 %v963_v5, %v962_v1  ;;  %v979_v11 = vrot.slane %v978_v7, 1 }
 0x297   : > { %v970_v10 = vadd.f32 %v969_v6, %v968_v2  ;;  %v985_v14 = vrot.slane %v984_v8, 1 }
 0x298   : > { %v971_v15 = vmul.f32 0.125, %v964_v9  ;;  %v980_v17 = vadd.f32 %v979_v11, %v978_v7 }
 0x299   : > { %v972_v16 = vmul.f32 0.125, %v970_v10  ;;  %v986_v18 = vadd.f32 %v985_v14, %v984_v8 }
 0x29a   : > { %v987_v19 = vmul.f32 0.125, %v980_v17  ;;  %v989_v21 = vmul.f32 %v971_v15, %v971_v15 }
 0x29b   : > { %v988_v20 = vmul.f32 0.125, %v986_v18  ;;  %v990_v22 = vmul.f32 %v972_v16, %v972_v16 }
 0x29c   : > { %v991_v23 = vsub.f32 %v987_v19, %v989_v21 }
 0x29d   : > { %v992_v24 = vsub.f32 %v988_v20, %v990_v22 }
 0x29e   : > { %v993_v25 = vadd.f32 1e-05, %v991_v23 }
 0x29f   : > { %v994_v26 = vadd.f32 1e-05, %v992_v24 }
 0x2a0   : > { %1895 = vrsqrt.f32 %v993_v25  ;;  %vm1001_vm3 = vweird.f32 %v993_v25 }
 0x2a1   : > { %1897 = vrsqrt.f32 %v994_v26  ;;  %vm1011_vm5 = vweird.f32 %v994_v26 }
 0x2a6   : > { %v1896_v27 = vpop.eup %1895 }
 0x2a7   : > { %v1898_v28 = vpop.eup %1897  ;;  %v996_v29 = vmul.f32 %v1896_v27, %v993_v25  ;;  %vm1002_vm4 = vweird.f32 %v1896_v27 }
 0x2a8   : > { %v1006_v30 = vmul.f32 %v1898_v28, %v994_v26  ;;  %vm1012_vm6 = vweird.f32 %v1898_v28  ;;  %vm1003_vm7 = vmor %vm1001_vm3, %vm1002_vm4 }
 0x2a9   : > { %v997_v31 = vmul.f32 %v1896_v27, %v996_v29  ;;  %vm1013_vm8 = vmor %vm1011_vm5, %vm1012_vm6 }
 0x2aa   : > { %v1007_v32 = vmul.f32 %v1898_v28, %v1006_v30 }
 0x2ab   : > { %v998_v33 = vmul.f32 0.5, %v997_v31 }
 0x2ac   : > { %v1008_v35 = vmul.f32 0.5, %v1007_v32 }
 0x2ad   : > { %v999_v36 = vsub.f32 1.5, %v998_v33 }
 0x2ae   : > { %v1009_v37 = vsub.f32 1.5, %v1008_v35 }
 0x2af   : > { %v1000_v39 = vmul.f32 %v1896_v27, %v999_v36 }
 0x2b0   : > { %v1010_v41 = vmul.f32 %v1898_v28, %v1009_v37 }
 0x2b1   : > { %v1004_v42 = vsel %vm1003_vm7, %v1896_v27, %v1000_v39 }
 0x2b2   : > { %v1014_v43 = vsel %vm1013_vm8, %v1898_v28, %v1010_v41  ;;  %v1020_v44 = vmul.f32 %v1016_v38, %v1004_v42 }
 0x2b3   : > { %v1021_v45 = vmul.f32 %v1017_v40, %v1014_v43 }
 0x2b4   : > { %v1022_v46 = vmul.f32 %v1020_v44, %v971_v15  ;;  %v1031_v48 = vperm.slane %v1020_v44, 0 }
 0x2b5   : > { %v1023_v47 = vmul.f32 %v1021_v45, %v972_v16  ;;  %v1032_v49 = vperm.slane %v1021_v45, 0 }
 0x2b6   : > { %v1033_v56 = vmul.f32 %v1031_v48, %v2612_v51 }
 0x2b7   : > { %v1026_v53 = vrot.slane %v1023_v47, 7  ;;  %v1034_v57 = vmul.f32 %v1032_v49, %v2614_v52 }
 0x2b9   : > { %v1028_v54 = vsel %vm1027_vm9, %v1022_v46, %v1026_v53 }
 0x2ba   : > { %v1030_v55 = vsub.f32 %v1600_v50, %v1028_v54 }
 0x2bc   : > { %v1036_v58 = vperm.slane %v1030_v55, 0  ;;  %v1037_v59 = vperm.slane %v1030_v55, 1 }
 0x2be   : > { %v1040_v60 = vadd.f32 %v1036_v58, %v1033_v56  ;;  %v1041_v61 = vadd.f32 %v1037_v59, %v1034_v57 }
 0x2c0   : > { %v1042_v62 = vadd.f32 %v1040_v60, %v2561_v12  ;;  %v1043_v63 = vadd.f32 %v1041_v61, %v2563_v13 }
 0x2c2   : > { %v1044_v0 = vmax.f32 %v1042_v62, 0.0  ;;  %v1045_v1 = vmax.f32 %v1043_v63, 0.0 }
 0x2c4   : > { %1046 = vst [vmem:[#allocation2] sm:$0xff] %v1044_v0 }
 0x2c5   : > { %1047 = vst [vmem:[#allocation2 + $0x8] sm:$0xff] %v1045_v1 }
 0x2c6 PF: > { %s2733_s22 = sld [smem:[#allocation26_spill]] }
 0x2cc   : > { %p1048_p0 = scmp.eq.s32.totalorder %s2733_s22, 1 }
 0x2ce   : > { %p1049_p2 = pnand %p1048_p0, %p949_p12 }
 0x2cf   : > { %s2735_s26 = sld [smem:[#allocation33_spill]] (!%p1049_p2) }
 0x2d0   : > { %1052 = sbr.rel (%p1049_p2) target bundleno = 892 (0x37c), region = 96 }
 0x2d5   : > { %v1726_v51 = vld [vmem:[#allocation15 + $0x38] sm:$0xff]  ;;  %v1725_v2 = vld [vmem:[#allocation15 + $0x30] sm:$0xff]  ;;  %v1724_v12 = vld [vmem:[#allocation15 + $0x28] sm:$0xff] }
 0x2d6   : > { %v1734_v52 = vld [vmem:[#allocation15 + $0x78] sm:$0xff]  ;;  %1189 = vmatpush.bf16.msra.mxu0 %v1726_v51  ;;  %v1733_v3 = vld [vmem:[#allocation15 + $0x70] sm:$0xff]  ;;  %v1732_v13 = vld [vmem:[#allocation15 + $0x68] sm:$0xff] }
 0x2d7   : > { %1202 = vmatpush.bf16.msra.mxu1 %v1734_v52  ;;  %v1723_v4 = vld [vmem:[#allocation15 + $0x20] sm:$0xff]  ;;  %v1722_v6 = vld [vmem:[#allocation15 + $0x18] sm:$0xff]  ;;  %v1721_v8 = vld [vmem:[#allocation15 + $0x10] sm:$0xff] }
 0x2d8   : > { %v1731_v5 = vld [vmem:[#allocation15 + $0x60] sm:$0xff]  ;;  %v1730_v7 = vld [vmem:[#allocation15 + $0x58] sm:$0xff]  ;;  %v1729_v9 = vld [vmem:[#allocation15 + $0x50] sm:$0xff] }
 0x2d9   : > { %v1720_v10 = vld [vmem:[#allocation15 + $0x8] sm:$0xff]  ;;  %v1719_v14 = vld [vmem:[#allocation15] sm:$0xff] }
 0x2da   : > { %1190 = vmatpush.bf16.msra.mxu0 %v1725_v2  ;;  %v1728_v11 = vld [vmem:[#allocation15 + $0x48] sm:$0xff]  ;;  %v1727_v15 = vld [vmem:[#allocation15 + $0x40] sm:$0xff] }
 0x2db   : > { %1203 = vmatpush.bf16.msra.mxu1 %v1733_v3  ;;  %v1053_v16 = vld [vmem:[#allocation2] sm:$0xff]  ;;  %v1054_v17 = vld [vmem:[#allocation2 + $0x8] sm:$0xff] }
 0x2dc   : > { %v1055_v18 = vpack.c.bf16 %v1053_v16, %v1053_v16  ;;  %v1056_v19 = vpack.c.bf16 %v1054_v17, %v1054_v17  ;;  %v1899_v20 = vld [vmem:[%s2735_s26] ss:$0 sm:$0xff] }
 0x2de   : > { %1191 = vmatpush.bf16.msra.mxu0 %v1724_v12 }
 0x2df   : > { %1204 = vmatpush.bf16.msra.mxu1 %v1732_v13 }
 0x2e2   : > { %1192 = vmatpush.bf16.msra.mxu0 %v1723_v4 }
 0x2e3   : > { %1205 = vmatpush.bf16.msra.mxu1 %v1731_v5 }
 0x2e6   : > { %1193 = vmatpush.bf16.msra.mxu0 %v1722_v6 }
 0x2e7   : > { %1206 = vmatpush.bf16.msra.mxu1 %v1730_v7 }
 0x2ea   : > { %1194 = vmatpush.bf16.msra.mxu0 %v1721_v8 }
 0x2eb   : > { %1207 = vmatpush.bf16.msra.mxu1 %v1729_v9 }
 0x2ee   : > { %1195 = vmatpush.bf16.msra.mxu0 %v1720_v10 }
 0x2ef   : > { %1208 = vmatpush.bf16.msra.mxu1 %v1728_v11 }
 0x2f2   : > { %1196 = vmatpush.bf16.msra.mxu0 %v1719_v14 }
 0x2f3   : > { %1209 = vmatpush.bf16.msra.mxu1 %v1727_v15 }
 0x2f5   : > { %1197 = vmatmul.bf16.vlgmr.msra.gmra.mxu0 %v1055_v18 }
 0x2f6   : > { %1210 = vmatmul.bf16.vlgmr.msra.gmra.mxu1 %v1056_v19 }
 0x372   : > { %v1198_v21 = vpop.f32.mrf.mxu0 }
 0x373   : > { %v1211_v22 = vpop.f32.mrf.mxu1  ;;  %v1199_v23 = vadd.f32 %v1899_v20, %v1198_v21 }
 0x375   : > { %v1212_v24 = vadd.f32 %v1211_v22, %v1199_v23 }
 0x377   : > { %1215 = vst [vmem:[#allocation16] sm:$0xff] %v1212_v24 }
 0x37a   : > { %v1200_v25 = vpop.f32.mrf.mxu0 }
 0x37b   : > { %v1213_v26 = vpop.f32.mrf.mxu1 }
 0x37c PF: > { %p1793_p3 = scmp.eq.s32.totalorder %s2359_s16, 3  ;;  %s2736_s11 = sld [smem:[#allocation34_spill]] }
 0x37d   : > { %s2259_s17 = smov [#allocation16]  }
 0x37e   : > { %s1222_s18 = sshll.u32 %s2259_s17, 4  ;;  %s1223_s18 = int_to_ptr.vmem [resolvable:$true] %s1222_s18 }
 0x382   : > { %s1224_s12 = sshll.u32 %s2736_s11, 4  ;;  %s1225_s12 = int_to_ptr.hbm [resolvable:$true] %s1224_s12 }
 0x383   : > { %1758 = dma.vmem_to_hbm [thread:$0]  (%p1793_p3), %s1223_s18, 128, %s1225_s12, [#allocation6]  }
 0x384   : > { %2203 = dma.done.wait (%p1793_p3), [#allocation6], 128  }
 0x385   : > { %2205 = vsyncadd (%p1793_p3), [#allocation6], 4294967168 }
 0x386 PF: > { %s27_s15 = sadd.s32 1, %s2248_s15   ;;  %s2737_s30 = sld [smem:[#allocation23_spill]] }
 0x387   : > { %p24_p6 = scmp.ge.s32.totalorder %s27_s15, 6   ;;  %s2738_s9 = sld [smem:[#allocation24_spill]] }
 0x388   : > { %s2739_s16 = smov %s2753_s10  ;;  %s2740_s27 = smov %s2212_s28 }
 0x389   : > { %s2741_s28 = smov %s2216_s29  ;;  %s2742_s29 = smov %s2495_s3 }
 0x38a   : > { %s2743_s10 = smov %s2755_s20  ;;  %s2744_s11 = smov %s2240_s13 }
 0x38b   : > { %s2745_s12 = smov %s2244_s14  ;;  %s2746_s13 = smov %s2749_s6 }
 0x38c   : > { %s2747_s14 = smov %s2739_s16  ;;  %26 = sbr.rel (!%p24_p6) target bundleno = 19 (0x13), region = 149 }
 0x391   :  { %1238 = vsyncpa [#allocation5], 1 }
 0x392   :  { %1240 = vsyncpa [#allocation5 + $0x1], 1 }
 0x393   :  { %1241 = vsyncpa [#allocation8], 1 }
 0x394   :  { %1242 = vsyncpa [#allocation11], 1 }
 0x395   :  { %1244 = vsyncpa [#allocation11 + $0x1], 1 }
 0x396   :  { %1245 = vsyncpa [#allocation14], 1 }
 0x397   :  { %1247 = vsyncpa [#allocation14 + $0x1], 1 }
 0x398   :  { %1248 = vsyncpa [#allocation6], 1 }
 0x399   :  { %1250 = vsyncpa [#allocation6 + $0x1], 1 }

</bundles_post_ra>
